<compile_context>
chip_gen: v5e
topology: v5e:2x2
jax: 0.10.0
libtpu: 0.0.40
codegen_flags: <defaults>
</compile_context>

<pallas_src>
import math

import jax
import jax.numpy as jnp
from jax.experimental import pallas as pl
from jax.experimental.pallas import tpu as pltpu


# ----------------------------------------------------------------------------- kernel
def _drop_path_kernel(scale_ref, x_ref, o_ref):
    # scale_ref: (TB, 1) float32 per-row scale (0 or 1/keep_prob), VMEM column.
    # x_ref / o_ref: (TB, TN) tile of the flattened (R, N) activations, VMEM.
    x = x_ref[...]
    s = scale_ref[...]                                # broadcasts over lanes
    o_ref[...] = (x.astype(jnp.float32) * s).astype(o_ref.dtype)


# ----------------------------------------------------------------------------- geometry helpers
def _divisors(n):
    ds = set()
    i = 1
    while i * i <= n:
        if n % i == 0:
            ds.add(i)
            ds.add(n // i)
        i += 1
    return sorted(ds)


def _choose_fold(B, n, *, max_rows=512, min_lanes=512):
    """Fold factor G: reshape (B, n) -> (B*G, n//G) so the row axis is well
    populated even for tiny batches.  Requires n//G to stay a multiple of 128
    (lane-dense) and at least `min_lanes` wide."""
    if B >= max_rows or n < 2 * min_lanes:
        return 1
    best = 1
    for g in _divisors(n):
        lanes = n // g
        if lanes < min_lanes or lanes % 128 != 0:
            continue
        if B * g > max_rows:
            continue
        if g > best:
            best = g
    return best


def _choose_tiles(R, N, itemsize, *, block_bytes=2 << 20, max_tb=512):
    """Pick (TB, TN) so each block is ~block_bytes (HBM-roofline sweet spot).
    Blocks need not divide the array; ragged boundaries are masked by Pallas."""
    # Row (sublane) tile: full R when small (always legal), otherwise a
    # multiple of 8 with a masked boundary block.
    TB = R if R <= max_tb else max_tb
    # Lane tile: byte-budgeted multiple of 128, never wider than needed.
    TN = (block_bytes // max(TB * itemsize, 1)) // 128 * 128
    TN = max(TN, 128)
    n_ceil = -(-N // 128) * 128
    TN = min(TN, n_ceil)
    if TN >= N:
        TN = N            # full-dim block (legal for any N, incl. N < 128)
    return TB, TN


# ----------------------------------------------------------------------------- wrapper
def drop_path(x, drop_prob: float = 0.0, training: bool = False, *, key=None,
              block_bytes: int = 2 << 20):
    """Matches torch drop_path semantics: out = x / keep_prob * bernoulli(keep_prob),
    one draw per sample (leading axis)."""
    if drop_prob == 0.0 or not training:
        return x
    assert key is not None, "drop_path in training mode needs a PRNG key"
    keep_prob = 1.0 - drop_prob

    B = x.shape[0]
    n = math.prod(x.shape[1:])
    if B == 0 or n == 0:
        return x

    # Per-sample mask, torch recipe: floor(keep_prob + U[0,1)); scale in f32.
    u = jax.random.uniform(key, (B,), dtype=jnp.float32)
    scale = jnp.floor(keep_prob + u) / jnp.float32(keep_prob)       # (B,)

    # Fold a divisor of n into the row axis (free reshape) for tiny batches.
    G = _choose_fold(B, n)
    R, N = B * G, n // G
    x2 = x.reshape(R, N)
    scale_col = (jnp.repeat(scale, G) if G > 1 else scale)[:, None]  # (R, 1) f32

    itemsize = x.dtype.itemsize
    TB, TN = _choose_tiles(R, N, itemsize, block_bytes=block_bytes)
    grid = (pl.cdiv(N, TN), pl.cdiv(R, TB))   # long (lane) axis first -> sharded on v7x

    tile_bytes = TB * TN * itemsize
    # in + out, double-buffered, plus scale column and compiler headroom;
    # clamp to 48 MiB so we never over-ask on v7x's 64 MiB physical VMEM.
    vmem_limit = int(min(48 << 20, max(8 << 20, 4 * tile_bytes + (2 << 20))))

    out = pl.pallas_call(
        _drop_path_kernel,
        out_shape=jax.ShapeDtypeStruct((R, N), x.dtype),
        grid=grid,
        in_specs=[
            # Per-row-tile scale column; when the B-tile axis has a single
            # block (the common case) this is DMA'd exactly once.
            pl.BlockSpec((TB, 1), lambda jn, ib: (ib, 0)),
            pl.BlockSpec((TB, TN), lambda jn, ib: (ib, jn)),
        ],
        out_specs=pl.BlockSpec((TB, TN), lambda jn, ib: (ib, jn)),
        compiler_params=pltpu.CompilerParams(
            dimension_semantics=("parallel", "parallel"),
            vmem_limit_bytes=vmem_limit,
        ),
        cost_estimate=pl.CostEstimate(
            flops=R * N,
            transcendentals=0,
            bytes_accessed=2 * R * N * itemsize + R * 4,
        ),
    )(scale_col, x2)

    return out.reshape(x.shape)


class DropPath:
    """JAX/Pallas equivalent of the PyTorch DropPath module."""

    def __init__(self, drop_prob=None):
        self.drop_prob = drop_prob if drop_prob is not None else 0.0
        self.training = True

    def __call__(self, x, *, key=None):
        return drop_path(x, self.drop_prob, self.training, key=key)


# ----------------------------------------------------------------------------- self-test
def _ref_drop_path(x, drop_prob, key):
    keep_prob = 1.0 - drop_prob
    u = jax.random.uniform(key, (x.shape[0],), dtype=jnp.float32)
    mask = jnp.floor(keep_prob + u).reshape((x.shape[0],) + (1,) * (x.ndim - 1))
    return x / keep_prob * mask


if __name__ == "__main__":
    key = jax.random.PRNGKey(0)
    kx, kdrop, kx2, kd2, kx3, kd3 = jax.random.split(key, 6)

    # Main case: small NCHW batch (module-consistent shapes), f32.
    B, C, H, W = 2, 4, 16, 16
    x = jax.random.normal(kx, (B, C, H, W), dtype=jnp.float32)
    mod = DropPath(drop_prob=0.25)
    y = jax.block_until_ready(mod(x, key=kdrop))
    y_ref = _ref_drop_path(x, 0.25, kdrop)
    assert jnp.allclose(y, y_ref, rtol=1e-5, atol=1e-6), "mismatch (main case)"

    # Ragged lane-axis case: odd C*H*W, small block budget to force a multi-block
    # grid with a masked boundary block along N.
    xr = jax.random.normal(kx2, (13, 3, 33, 35), dtype=jnp.float32)
    yr = jax.block_until_ready(drop_path(xr, 0.4, True, key=kd2, block_bytes=64 << 10))
    yr_ref = _ref_drop_path(xr, 0.4, kd2)
    assert jnp.allclose(yr, yr_ref, rtol=1e-5, atol=1e-6), "mismatch (ragged N)"

    # Ragged row-axis case: B > row-tile cap and not a multiple of the tile,
    # non-4D input to exercise the generic flatten.
    xs = jax.random.normal(kx3, (520, 8, 16), dtype=jnp.float32)
    ys = jax.block_until_ready(drop_path(xs, 0.3, True, key=kd3))
    ys_ref = _ref_drop_path(xs, 0.3, kd3)
    assert jnp.allclose(ys, ys_ref, rtol=1e-5, atol=1e-6), "mismatch (ragged B)"

    # Eval mode / zero drop prob -> identity (no kernel).
    mod.training = False
    y_eval = jax.block_until_ready(mod(x))
    assert jnp.array_equal(y_eval, x)
    assert drop_path(x, 0.0, True, key=kdrop) is x

    print("KERNEL_OK")
</pallas_src>

<mosaic_0001>
module attributes {stable_mosaic.version = 11 : i64} {
  func.func @_drop_path_kernel(%arg0: i32, %arg1: i32, %arg2: memref<4x1xf32, #tpu.memory_space<vmem>>, %arg3: memref<4x512xf32, #tpu.memory_space<vmem>>, %arg4: memref<4x512xf32, #tpu.memory_space<vmem>>) attributes {dimension_semantics = [#tpu.dimension_semantics<parallel>, #tpu.dimension_semantics<parallel>], iteration_bounds = array<i64: 1, 1>, scalar_prefetch = 0 : i64, scratch_operands = 0 : i64, tpu.core_type = #tpu.core_type<tc>, window_params = [{transform_indices = @transform_0, window_bounds = array<i64: 4, 1>}, {transform_indices = @transform_1, window_bounds = array<i64: 4, 512>}, {transform_indices = @transform_2, window_bounds = array<i64: 4, 512>}]} {
    %c0 = arith.constant 0 : index
    %c0_0 = arith.constant 0 : index
    %0 = vector.load %arg3[%c0, %c0_0] : memref<4x512xf32, #tpu.memory_space<vmem>>, vector<4x512xf32>
    %c0_1 = arith.constant 0 : index
    %c0_2 = arith.constant 0 : index
    %1 = vector.load %arg2[%c0_1, %c0_2] : memref<4x1xf32, #tpu.memory_space<vmem>>, vector<4x1xf32>
    %2 = vector.broadcast %1 : vector<4x1xf32> to vector<4x512xf32>
    %3 = arith.mulf %0, %2 : vector<4x512xf32>
    %c0_3 = arith.constant 0 : index
    %c0_4 = arith.constant 0 : index
    %4 = vector.load %arg4[%c0_3, %c0_4] : memref<4x512xf32, #tpu.memory_space<vmem>>, vector<4x512xf32>
    tpu.vector_store %arg4[%c0_3, %c0_4], %3 {strides = array<i32>} : memref<4x512xf32, #tpu.memory_space<vmem>>, vector<4x512xf32>,
    return
  }
  func.func @transform_0(%arg0: i32, %arg1: i32) -> (i32, i32) {
    %c0_i32 = arith.constant 0 : i32
    %c0_i32_0 = arith.constant 0 : i32
    return %arg1, %c0_i32 : i32, i32
  }
  func.func @transform_1(%arg0: i32, %arg1: i32) -> (i32, i32) {
    %c0_i32 = arith.constant 0 : i32
    return %arg1, %arg0 : i32, i32
  }
  func.func @transform_2(%arg0: i32, %arg1: i32) -> (i32, i32) {
    %c0_i32 = arith.constant 0 : i32
    return %arg1, %arg0 : i32, i32
  }
}

</mosaic_0001>

<bundles_post_ra>
// kernel: tpu_custom_call.1
= control target key start
LH: loop header
LB: loop body
LE: loop exit
PB: predicated region body
PF: predicated region fallthrough
CT: control target
= control target key end

     0   :  { %7 = vsyncpa [#allocation3], 0  ;;  %s144_s0 = inlined_call_operand.vmem [shape: f32[4,1], index: 0, kind: input, shape index: {}]   ;;  %s145_s1 = inlined_call_operand.hbm [shape: f32[4,512], index: 1, kind: input, shape index: {}]   ;;  %s146_s2 = inlined_call_operand.hbm [shape: f32[4,512], index: 2, kind: output, shape index: {}]  }
   0x1   :  { %8 = vsyncpa [#allocation4], 0  ;;  %s16_s11 = sshll.u32 %s145_s1, 4  ;;  %s116_s12 = smov [#allocation2]   ;;  %s17_s11 = int_to_ptr.hbm [resolvable:$true] %s16_s11 }
   0x2   :  { %s18_s13 = sshll.u32 %s116_s12, 4  ;;  %s19_s13 = int_to_ptr.vmem [resolvable:$true] %s18_s13 }
   0x3   :  { %21 = dma.hbm_to_vmem [thread:$0]  %s17_s11, 256, %s19_s13, [#allocation3]  }
   0x4   :  { %112 = dma.done.wait [#allocation3], 256  }
   0x5   :  { %113 = vsyncadd [#allocation3], 4294967040  ;;  %v117_v0 = vmov 0   ;;  %v28_v1 = vld [vmem:[%s144_s0] sm:$0xf]  ;;  %v27_v7 = vld [vmem:[#allocation2 + $0x8] sm:$0xff] }
   0x6   :  { %63 = vset.pattern.permute.xlu0 %v117_v0  ;;  %v118_v2 = vmov 839922192   ;;  %v26_v6 = vld [vmem:[#allocation2] sm:$0xff]  ;;  %s119_s1 = smov [#allocation5]   ;;  %s49_s19 = sshll.u32 %s146_s2, 4  ;;  %s50_s19 = int_to_ptr.hbm [resolvable:$true] %s49_s19 }
   0x7   :  { %31 = vperm.xlu0 %63, %v28_v1   ;;  %v34_v3 = vunpack.c.l.s4 %v118_v2  ;;  %s47_s16 = sshll.u32 %s119_s1, 4  ;;  %s48_s16 = int_to_ptr.vmem [resolvable:$true] %s47_s16 }
   0x9   :  { %v35_v4 = vunpack.c.0.s8 %v34_v3 }
  0x79   :  { %v32_v5 = vpop.permute.xlu0 %31 }
  0x7a   :  { %v36_v8 = vperm.slane %v32_v5, %v35_v4 }
  0x7c   :  { %v38_v9 = vmul.f32 %v36_v8, %v26_v6  ;;  %v39_v10 = vmul.f32 %v36_v8, %v27_v7 }
  0x7e   :  { %40 = vst [vmem:[#allocation5] sm:$0xff] %v38_v9 }
  0x7f   :  { %41 = vst [vmem:[#allocation5 + $0x8] sm:$0xff] %v39_v10 }
  0x80   :  { %52 = dma.vmem_to_hbm [thread:$0]  %s48_s16, 256, %s50_s19, [#allocation4]  }
  0x81   :  { %114 = dma.done.wait [#allocation4], 256  }
  0x82   :  { %115 = vsyncadd [#allocation4], 4294967040 }
  0x83   :  { %57 = vsyncpa [#allocation3], 1 }
  0x84   :  { %58 = vsyncpa [#allocation4], 1 }

</bundles_post_ra>
